<compile_context>
chip_gen: v7x
topology: tpu7x:2x2x1
jax: 0.10.0
libtpu: 0.0.40
codegen_flags: <defaults>
</compile_context>

<pallas_src>
import jax
import jax.numpy as jnp
from jax.experimental import pallas as pl
from jax.experimental.pallas import tpu as pltpu


def _ceil_to(x: int, m: int) -> int:
    return (x + m - 1) // m * m


def _cdiv(a: int, b: int) -> int:
    return (a + b - 1) // b


def _make_single_k_kernel(bs, latent_dim, compute_dtype):
    # x_ref: (bs, TF, K)   w_ref: (K, N)   b_ref: (1, N) f32
    # o_ref: (TF, bs*N)    -- frame-major rows, batch folded into lanes
    def kernel(x_ref, w_ref, b_ref, o_ref):
        w = w_ref[...]
        bias = b_ref[...]
        for b in range(bs):
            xb = x_ref[b]                                   # (TF, K)
            if compute_dtype is not None:
                xb = xb.astype(compute_dtype)
            y = jnp.dot(xb, w, preferred_element_type=jnp.float32) + bias
            o_ref[:, b * latent_dim:(b + 1) * latent_dim] = y.astype(o_ref.dtype)

    return kernel


def _make_ktiled_kernel(bs, latent_dim, compute_dtype):
    # Same as above but with K tiled on the last grid axis and an f32
    # accumulator scratch (TF, bs*N) resident across K, initialized with bias.
    def kernel(x_ref, w_ref, b_ref, o_ref, acc_ref):
        k = pl.program_id(1)
        tf = acc_ref.shape[0]

        @pl.when(k == 0)
        def _init():
            bias_bc = jnp.broadcast_to(b_ref[...], (tf, latent_dim))
            for b in range(bs):
                acc_ref[:, b * latent_dim:(b + 1) * latent_dim] = bias_bc

        w = w_ref[...]
        for b in range(bs):
            xb = x_ref[b]
            if compute_dtype is not None:
                xb = xb.astype(compute_dtype)
            acc_ref[:, b * latent_dim:(b + 1) * latent_dim] += jnp.dot(
                xb, w, preferred_element_type=jnp.float32)

        @pl.when(k == pl.num_programs(1) - 1)
        def _fin():
            o_ref[...] = acc_ref[...].astype(o_ref.dtype)

    return kernel


def h2o_dist_input_process(x, weight_t, bias, *, compute_dtype=None, out_dtype=None):
    """Forward of H2ODistInputProcess.

    x:        (bs, nframes, nfeats)
    weight_t: (nfeats, latent_dim)  -- nn.Linear weight stored transposed
    bias:     (latent_dim,)
    returns:  (nframes, bs, latent_dim)
    """
    bs, nframes, nfeats = x.shape
    latent_dim = weight_t.shape[1]
    out_dtype = x.dtype if out_dtype is None else out_dtype

    # Only the (small) weight is cast in the wrapper; x is cast in-kernel.
    if compute_dtype is not None:
        weight_t = weight_t.astype(compute_dtype)
    b2d = bias.astype(jnp.float32).reshape(1, latent_dim)

    x_it = jnp.dtype(x.dtype).itemsize
    w_it = jnp.dtype(weight_t.dtype).itemsize
    o_it = jnp.dtype(out_dtype).itemsize

    n_lane = _ceil_to(latent_dim, 128)        # weight lane width (VMEM layout)
    on_lane = _ceil_to(bs * latent_dim, 128)  # output lane width (VMEM layout)

    # ---- K residency decision ----------------------------------------------
    WEIGHT_RESIDENT_BUDGET = 12 << 20   # bytes, incl. double buffer
    w_resident_bytes = 2 * _ceil_to(nfeats, 8) * n_lane * w_it
    if w_resident_bytes <= WEIGHT_RESIDENT_BUDGET:
        tk, k_steps = nfeats, 1
    else:
        k_total = _ceil_to(nfeats, 128)
        tk = 512
        while k_total % tk:
            tk //= 2
        k_steps = k_total // tk
        if k_total != nfeats:
            # Fallback only for huge, non-128-aligned K: costs one extra pass.
            x = jnp.pad(x, ((0, 0), (0, 0), (0, k_total - nfeats)))
            weight_t = jnp.pad(weight_t, ((0, k_total - nfeats), (0, 0)))

    # ---- frame (M) tile ------------------------------------------------------
    MAX_TF = 256
    if nframes <= MAX_TF:
        half = _ceil_to(_cdiv(nframes, 2), 8)
        if nframes >= 64 and half < nframes:
            tf = half                # >=2 frame tiles so both v7x TCs get work
        else:
            tf = nframes             # == full dim -> always layout-legal
    else:
        tf = MAX_TF                  # multiple of 8; ragged last block is fine

    def _footprint(tf_):
        xb = 2 * bs * _ceil_to(tf_, 8) * _ceil_to(tk, 128) * x_it
        wb = 2 * _ceil_to(tk, 8) * n_lane * w_it
        bb = 2 * 8 * n_lane * 4
        ob = 2 * _ceil_to(tf_, 8) * on_lane * o_it
        ab = _ceil_to(tf_, 8) * on_lane * 4 if k_steps > 1 else 0
        return xb + wb + bb + ob + ab

    WORK_BUDGET = 28 << 20           # keeps tiles safe on v7x's smaller VMEM
    while _footprint(tf) > WORK_BUDGET and tf > 8:
        tf = max(8, _ceil_to(tf // 2, 8))

    f_tiles = _cdiv(nframes, tf)
    vmem_limit = min(max(int(1.5 * _footprint(tf)) + (4 << 20), 32 << 20), 48 << 20)

    cost = pl.CostEstimate(
        flops=2 * bs * nframes * nfeats * latent_dim,
        transcendentals=0,
        bytes_accessed=(bs * nframes * nfeats * x_it
                        + nfeats * latent_dim * w_it
                        + latent_dim * 4
                        + bs * nframes * latent_dim * o_it),
    )

    out_shape = jax.ShapeDtypeStruct((nframes, bs * latent_dim), out_dtype)

    if k_steps == 1:
        kernel = _make_single_k_kernel(bs, latent_dim, compute_dtype)
        grid_spec = pltpu.PrefetchScalarGridSpec(
            num_scalar_prefetch=0,
            grid=(f_tiles,),
            in_specs=[
                pl.BlockSpec((bs, tf, tk), lambda f: (0, f, 0)),
                pl.BlockSpec((tk, latent_dim), lambda f: (0, 0)),   # resident
                pl.BlockSpec((1, latent_dim), lambda f: (0, 0)),
            ],
            out_specs=pl.BlockSpec((tf, bs * latent_dim), lambda f: (f, 0)),
        )
        dims = ("parallel",)
    else:
        kernel = _make_ktiled_kernel(bs, latent_dim, compute_dtype)
        grid_spec = pltpu.PrefetchScalarGridSpec(
            num_scalar_prefetch=0,
            grid=(f_tiles, k_steps),
            in_specs=[
                pl.BlockSpec((bs, tf, tk), lambda f, k: (0, f, k)),
                pl.BlockSpec((tk, latent_dim), lambda f, k: (k, 0)),
                pl.BlockSpec((1, latent_dim), lambda f, k: (0, 0)),
            ],
            out_specs=pl.BlockSpec((tf, bs * latent_dim), lambda f, k: (f, 0)),
            scratch_shapes=[pltpu.VMEM((tf, bs * latent_dim), jnp.float32)],
        )
        dims = ("parallel", "arbitrary")

    out2d = pl.pallas_call(
        kernel,
        out_shape=out_shape,
        grid_spec=grid_spec,
        compiler_params=pltpu.CompilerParams(
            dimension_semantics=dims,
            vmem_limit_bytes=vmem_limit,
        ),
        cost_estimate=cost,
    )(x, weight_t, b2d)

    # Free (bitcast) reshape: (nframes, bs*latent) -> (nframes, bs, latent).
    return out2d.reshape(nframes, bs, latent_dim)


def init_linear_params(key, input_feats, latent_dim, dtype=jnp.float32):
    # Deterministic init mimicking nn.Linear: U(-1/sqrt(fan_in), 1/sqrt(fan_in)).
    kw, kb = jax.random.split(key)
    bound = 1.0 / jnp.sqrt(jnp.array(input_feats, dtype=jnp.float32))
    # Stored transposed relative to PyTorch's (out, in): here (in, out).
    weight_t = jax.random.uniform(
        kw, (input_feats, latent_dim), dtype=dtype, minval=-bound, maxval=bound
    )
    bias = jax.random.uniform(
        kb, (latent_dim,), dtype=dtype, minval=-bound, maxval=bound
    )
    return weight_t, bias


if __name__ == "__main__":
    bs = 2
    nframes = 8
    input_feats = 32
    latent_dim = 64

    key = jax.random.PRNGKey(0)
    kx, kp = jax.random.split(key)

    x = jax.random.normal(kx, (bs, nframes, input_feats), dtype=jnp.float32)
    weight_t, bias = init_linear_params(kp, input_feats, latent_dim)

    # Pure-JAX reference of the module forward.
    ref = jnp.transpose(x, (1, 0, 2)) @ weight_t + bias

    # f32 path (exact match).
    out = h2o_dist_input_process(x, weight_t, bias)
    out = jax.block_until_ready(out)
    assert out.shape == (nframes, bs, latent_dim), out.shape
    assert jnp.allclose(out, ref, atol=1e-5, rtol=1e-5), "mismatch vs reference (f32)"

    # bf16 MXU-feed path (x cast in-kernel, f32 accumulate + f32 bias add).
    out_bf16 = h2o_dist_input_process(x, weight_t, bias, compute_dtype=jnp.bfloat16)
    out_bf16 = jax.block_until_ready(out_bf16)
    assert jnp.allclose(out_bf16, ref, atol=5e-2, rtol=5e-2), "mismatch vs reference (bf16)"

    print("KERNEL_OK")
</pallas_src>

<mosaic_0001>
module attributes {stable_mosaic.version = 11 : i64} {
  func.func @kernel(%arg0: i32, %arg1: memref<2x8x32xf32, #tpu.memory_space<vmem>>, %arg2: memref<32x64xf32, #tpu.memory_space<vmem>>, %arg3: memref<1x64xf32, #tpu.memory_space<vmem>>, %arg4: memref<8x128xf32, #tpu.memory_space<vmem>>) attributes {dimension_semantics = [#tpu.dimension_semantics<parallel>], iteration_bounds = array<i64: 1>, scalar_prefetch = 0 : i64, scratch_operands = 0 : i64, tpu.core_type = #tpu.core_type<tc>, window_params = [{transform_indices = @transform_0, window_bounds = array<i64: 2, 8, 32>}, {pipeline_mode = #tpu.pipeline_mode<synchronous>, transform_indices = @transform_1, window_bounds = array<i64: 32, 64>}, {pipeline_mode = #tpu.pipeline_mode<synchronous>, transform_indices = @transform_2, window_bounds = array<i64: 1, 64>}, {transform_indices = @transform_3, window_bounds = array<i64: 8, 128>}]} {
    %c0 = arith.constant 0 : index
    %c0_0 = arith.constant 0 : index
    %0 = vector.load %arg2[%c0, %c0_0] : memref<32x64xf32, #tpu.memory_space<vmem>>, vector<32x64xf32>
    %c0_1 = arith.constant 0 : index
    %c0_2 = arith.constant 0 : index
    %1 = vector.load %arg3[%c0_1, %c0_2] : memref<1x64xf32, #tpu.memory_space<vmem>>, vector<1x64xf32>
    %c0_3 = arith.constant 0 : index
    %c0_4 = arith.constant 0 : index
    %c0_5 = arith.constant 0 : index
    %2 = vector.load %arg1[%c0_3, %c0_4, %c0_5] : memref<2x8x32xf32, #tpu.memory_space<vmem>>, vector<1x8x32xf32>
    %3 = vector.shape_cast %2 : vector<1x8x32xf32> to vector<8x32xf32>
    %cst = arith.constant dense<0.000000e+00> : vector<8x64xf32>
    %4 = tpu.matmul %3, %0, %cst {dimension_numbers = #tpu.dot_dimension_numbers<[1], [0], [0], [1], [0, 0, 1, 1], [], []>} : vector<8x32xf32>, vector<32x64xf32>, vector<8x64xf32> -> vector<8x64xf32>
    %5 = vector.broadcast %1 : vector<1x64xf32> to vector<8x64xf32>
    %6 = arith.addf %4, %5 : vector<8x64xf32>
    %c0_6 = arith.constant 0 : index
    %c0_7 = arith.constant 0 : index
    %7 = vector.load %arg4[%c0_6, %c0_7] : memref<8x128xf32, #tpu.memory_space<vmem>>, vector<8x64xf32>
    tpu.vector_store %arg4[%c0_6, %c0_7], %6 {strides = array<i32>} : memref<8x128xf32, #tpu.memory_space<vmem>>, vector<8x64xf32>,
    %c1 = arith.constant 1 : index
    %c0_8 = arith.constant 0 : index
    %c0_9 = arith.constant 0 : index
    %8 = vector.load %arg1[%c1, %c0_8, %c0_9] : memref<2x8x32xf32, #tpu.memory_space<vmem>>, vector<1x8x32xf32>
    %9 = vector.shape_cast %8 : vector<1x8x32xf32> to vector<8x32xf32>
    %cst_10 = arith.constant dense<0.000000e+00> : vector<8x64xf32>
    %10 = tpu.matmul %9, %0, %cst_10 {dimension_numbers = #tpu.dot_dimension_numbers<[1], [0], [0], [1], [0, 0, 1, 1], [], []>} : vector<8x32xf32>, vector<32x64xf32>, vector<8x64xf32> -> vector<8x64xf32>
    %11 = vector.broadcast %1 : vector<1x64xf32> to vector<8x64xf32>
    %12 = arith.addf %10, %11 : vector<8x64xf32>
    %c0_11 = arith.constant 0 : index
    %c64 = arith.constant 64 : index
    %13 = vector.load %arg4[%c0_11, %c64] : memref<8x128xf32, #tpu.memory_space<vmem>>, vector<8x64xf32>
    tpu.vector_store %arg4[%c0_11, %c64], %12 {strides = array<i32>} : memref<8x128xf32, #tpu.memory_space<vmem>>, vector<8x64xf32>,
    return
  }
  func.func @transform_0(%arg0: i32) -> (i32, i32, i32) {
    %c0_i32 = arith.constant 0 : i32
    %c0_i32_0 = arith.constant 0 : i32
    %c0_i32_1 = arith.constant 0 : i32
    return %c0_i32, %arg0, %c0_i32_0 : i32, i32, i32
  }
  func.func @transform_1(%arg0: i32) -> (i32, i32) {
    %c0_i32 = arith.constant 0 : i32
    %c0_i32_0 = arith.constant 0 : i32
    %c0_i32_1 = arith.constant 0 : i32
    return %c0_i32, %c0_i32_0 : i32, i32
  }
  func.func @transform_2(%arg0: i32) -> (i32, i32) {
    %c0_i32 = arith.constant 0 : i32
    %c0_i32_0 = arith.constant 0 : i32
    %c0_i32_1 = arith.constant 0 : i32
    return %c0_i32, %c0_i32_0 : i32, i32
  }
  func.func @transform_3(%arg0: i32) -> (i32, i32) {
    %c0_i32 = arith.constant 0 : i32
    %c0_i32_0 = arith.constant 0 : i32
    return %arg0, %c0_i32 : i32, i32
  }
}

</mosaic_0001>

<bundles_post_ra>
// kernel: tpu_custom_call.1
= control target key start
LH: loop header
LB: loop body
LE: loop exit
PB: predicated region body
PF: predicated region fallthrough
CT: control target
= control target key end

     0   :  { %8 = vsyncpa [#allocation3], 0  ;;  %s424_s0 = inlined_call_operand.hbm [shape: f32[2,8,32], index: 0, kind: input, shape index: {}]   ;;  %s425_s1 = inlined_call_operand.hbm [shape: f32[32,64], index: 1, kind: input, shape index: {}]   ;;  %s426_s2 = inlined_call_operand.vmem [shape: f32[1,64], index: 2, kind: input, shape index: {}]   ;;  %s427_s3 = inlined_call_operand.hbm [shape: f32[8,128], index: 3, kind: output, shape index: {}]  }
   0x1   :  { %9 = vsyncpa [#allocation6], 0 }
   0x2   :  { %10 = vsyncpa [#allocation4], 0  ;;  %s356_s12 = smov [#allocation2]   ;;  %s284_s16 = scalar_lea.hbm %s424_s0, 256 }
   0x3   :  { %s16_s13 = sshll.u32 %s356_s12, 4  ;;  %p285_p0 = scmp.ne.s32.totalorder %s424_s0, %s284_s16  ;;  %s17_s13 = int_to_ptr.vmem [resolvable:$true] %s16_s13 }
   0x4   :  { %p288_p1 = scmp.lt.u32.totalorder %s284_s16, %s424_s0 }
   0x6   :  { %p290_p2 = pnand %p288_p1, %p285_p0 }
   0x8   :  { %293 = shalt.err (!%p290_p2)
}
   0x9   :  { %s294_s21 = scalar_lea.vmem %s17_s13, 256  ;;  %p299_p4 = scmp.lt.s32.totalorder %s17_s13, %s17_s13 }
   0xa   :  { %p295_p3 = scmp.ne.s32.totalorder %s17_s13, %s294_s21  ;;  %p300_p5 = scmp.lt.s32.totalorder %s294_s21, %s294_s21 }
   0xc   :  { %p301_p6 = por %p300_p5, %p299_p4 }
   0xe   :  { %p302_p7 = pnand %p301_p6, %p295_p3 }
  0x10   :  { %305 = shalt.err (!%p302_p7)
}
  0x11   :  { %s357_s22 = smov 128   ;;  %s358_s23 = smov 8  }
  0x12   :  { %22 = dma.hbm_to_vmem [thread:$0]  %s424_s0, 256, %s17_s13, [#allocation3], %s357_s22, %s357_s22, %s358_s23  }
  0x13   :  { %s359_s26 = smov [#allocation5]   ;;  %s306_s30 = scalar_lea.hbm %s425_s1, 512 }
  0x14   :  { %s28_s27 = sshll.u32 %s359_s26, 4  ;;  %p307_p8 = scmp.ne.s32.totalorder %s425_s1, %s306_s30  ;;  %s29_s27 = int_to_ptr.vmem [resolvable:$true] %s28_s27 }
  0x15   :  { %p310_p9 = scmp.lt.u32.totalorder %s306_s30, %s425_s1 }
  0x17   :  { %p312_p10 = pnand %p310_p9, %p307_p8 }
  0x19   :  { %315 = shalt.err (!%p312_p10)
}
  0x1a   :  { %s316_s8 = scalar_lea.vmem %s29_s27, 512  ;;  %p321_p12 = scmp.lt.s32.totalorder %s29_s27, %s29_s27 }
  0x1b   :  { %p317_p11 = scmp.ne.s32.totalorder %s29_s27, %s316_s8  ;;  %p322_p13 = scmp.lt.s32.totalorder %s316_s8, %s316_s8 }
  0x1d   :  { %p323_p0 = por %p322_p13, %p321_p12 }
  0x1f   :  { %p324_p1 = pnand %p323_p0, %p317_p11 }
  0x21   :  { %327 = shalt.err (!%p324_p1)
}
  0x22   :  { %34 = dma.hbm_to_vmem [thread:$0]  %s425_s1, 512, %s29_s27, [#allocation6], %s357_s22, %s357_s22, %s358_s23  }
  0x23   :  { %350 = dma.done.wait [#allocation3], 256  }
  0x24   :  { %351 = vsyncadd [#allocation3], 4294967040 }
  0x25   :  { %352 = dma.done.wait [#allocation6], 512  }
  0x26   :  { %353 = vsyncadd [#allocation6], 4294966784  ;;  %v360_v0 = vmov 0.0|0.0   ;;  %vm361_vm0 = vmmov 0   ;;  %v362_v1 = vmov 0.0   ;;  %v43_v2 = vld [vmem:[#allocation5] sm:$0xff] }
  0x27   :  { %269 = vmatprep.subr.bf16.mxu1 %v360_v0  ;;  %260 = vmatprep.mubr.msk.f32.mxu1 %vm361_vm0, %v362_v1  ;;  %v44_v3 = vld [vmem:[#allocation5 + $0x8] sm:$0xff]  ;;  %v45_v4 = vld [vmem:[#allocation5 + $0x10] sm:$0xff]  ;;  %v46_v6 = vld [vmem:[#allocation5 + $0x18] sm:$0xff]  ;;  %vm55_vm1 = vcmask 261120   ;;  %vm129_vm2 = vcmask 523264   ;;  %s363_s11 = smov 64  }
  0x28   :  { %263 = vmatprep.subr.bf16.mxu0 %v360_v0  ;;  %249 = vmatprep.mubr.msk.f32.mxu0 %vm361_vm0, %v362_v1  ;;  %v264_v5 = vpack.c.bf16 %v44_v3, %v43_v2  ;;  %v267_v7 = vpack.c.bf16 %v46_v6, %v45_v4  ;;  %v132_v8 = vld [vmem:[#allocation2 + $0x8] sm:$0xff]  ;;  %v48_v9 = vld [vmem:[#allocation2] sm:$0xff]  ;;  %s364_s12 = smov [#allocation7]   ;;  %vm210_vm3 = vcmask 1048064  }
  0x29   :  { %v228_v10 = vld [vmem:[%s426_s2] ss:$0 sm:$0xff]  ;;  %s218_s13 = sshll.u32 %s364_s12, 4  ;;  %s219_s13 = int_to_ptr.vmem [resolvable:$true] %s218_s13 }
  0x2a   :  { %271 = vmatpush3.bf16.msra.mxu1 %v264_v5  ;;  %265 = vmatpush3.bf16.msra.mxu0 %v264_v5  ;;  %s328_s14 = scalar_lea.vmem %s219_s13, 128  ;;  %p333_p3 = scmp.lt.s32.totalorder %s219_s13, %s219_s13 }
  0x2b   :  { %272 = vmatprep.subr.bf16.mxu1 %v360_v0  ;;  %266 = vmatprep.subr.bf16.mxu0 %v360_v0  ;;  %p329_p2 = scmp.ne.s32.totalorder %s219_s13, %s328_s14  ;;  %p334_p4 = scmp.lt.s32.totalorder %s328_s14, %s328_s14 }
  0x2d   :  { %p335_p5 = por %p334_p4, %p333_p3 }
  0x2e   :  { %274 = vmatpush3.bf16.msra.mxu1 %v267_v7  ;;  %268 = vmatpush3.bf16.msra.mxu0 %v267_v7 }
  0x2f   :  { %p336_p6 = pnand %p335_p5, %p329_p2 }
  0x31   :  { %261 = vmatmul.mubr.msk.f32.vlgmr.msra.gmra.mrb[0].mxu1 %vm55_vm1, %v132_v8  ;;  %250 = vmatmul.mubr.msk.f32.vlgmr.msra.gmra.mrb[0].mxu0 %vm55_vm1, %v48_v9 }
 0x104   :  { %v202_v11 = vpop.f32.mrb[0].mxu1  ;;  %v125_v12 = vpop.f32.mrb[0].mxu0 }
 0x105   :  { %v203_v13 = vadd.f32 %v228_v10, %v202_v11  ;;  %v262_v14 = vpop.f32.mrb[1].mxu1  ;;  %v126_v15 = vadd.f32 %v228_v10, %v125_v12  ;;  %v251_v16 = vpop.f32.mrb[1].mxu0 }
 0x107   :  { %207 = vrot.lane.b32.xlu0 %v203_v13, %s363_s11  ;;  %130 = vst.msk [vmem:[#allocation7] sm:$0xff] %vm129_vm2, %v126_v15 }
 0x179   :  { %v208_v17 = vpop.permute.xlu0 %207 }
 0x17a   :  { %211 = vst.msk [vmem:[#allocation7] sm:$0xff] %vm210_vm3, %v208_v17 }
 0x17b   :  { %339 = shalt.err (!%p336_p6)
}
 0x17c   :  { %s340_s16 = scalar_lea.hbm %s427_s3, 128 }
 0x17d   :  { %p341_p7 = scmp.ne.s32.totalorder %s427_s3, %s340_s16  ;;  %p344_p8 = scmp.lt.u32.totalorder %s340_s16, %s427_s3 }
 0x17f   :  { %p346_p9 = pnand %p344_p8, %p341_p7 }
 0x181   :  { %349 = shalt.err (!%p346_p9)
}
 0x182   :  { %221 = dma.vmem_to_hbm [thread:$0]  %s219_s13, 128, %s427_s3, [#allocation4]  }
 0x183   :  { %354 = dma.done.wait [#allocation4], 128  }
 0x184   :  { %355 = vsyncadd [#allocation4], 4294967168 }
 0x185   :  { %225 = vsyncpa [#allocation3], 1 }
 0x186   :  { %226 = vsyncpa [#allocation6], 1 }
 0x187   :  { %227 = vsyncpa [#allocation4], 1 }

</bundles_post_ra>
